<compile_context>
chip_gen: v5e
topology: v5e:2x2
jax: 0.10.0
libtpu: 0.0.40
codegen_flags: <defaults>
</compile_context>

<pallas_src>
import functools

import jax
import jax.numpy as jnp
from jax.experimental import pallas as pl
from jax.experimental.pallas import tpu as pltpu

# Demo shapes (num_in / num_out are external globals in the original script).
# Chosen small but large enough to exercise the K-accumulation grid axis and a
# lane-dense (128-wide) output tile.
BATCH = 16
NUM_IN = 512    # K
NUM_OUT = 128   # N


def _linear_kernel(x_ref, w_ref, b_ref, o_ref, acc_ref):
    """One (tm, tn) output tile, accumulating over the K grid axis.

    x_ref : (tm, tk) bf16  activation tile
    w_ref : (tn, tk) bf16  weight tile in PyTorch (out, in) layout; the
                           transpose is folded into the contraction below.
    b_ref : (1, tn)  f32   bias tile (indexed by the N grid axis only)
    o_ref : (tm, tn)       output tile
    acc_ref:(tm, tn) f32   VMEM accumulator scratch (lives across K steps)
    """
    k = pl.program_id(2)

    @pl.when(k == 0)
    def _():
        acc_ref[...] = jnp.zeros_like(acc_ref)

    # x @ W.T on the MXU: contract the last axis of both operands.
    acc_ref[...] += jax.lax.dot_general(
        x_ref[...], w_ref[...],
        dimension_numbers=(((1,), (1,)), ((), ())),
        preferred_element_type=jnp.float32,
    )

    @pl.when(k == pl.num_programs(2) - 1)
    def _():
        # f32 epilogue: bias add + cast to output dtype.
        o_ref[...] = (acc_ref[...] + b_ref[...]).astype(o_ref.dtype)


def _pad_dim(a, axis, multiple):
    pad = (-a.shape[axis]) % multiple
    if pad == 0:
        return a
    widths = [(0, 0)] * a.ndim
    widths[axis] = (0, pad)
    return jnp.pad(a, widths)


@functools.partial(jax.jit, static_argnames=("tm", "tn", "tk"))
def model_forward(x, weight, bias, *, tm=128, tn=128, tk=256):
    """Forward pass of scClass Model: y = x @ weight.T + bias.

    x      : (B, num_in)        float32
    weight : (num_out, num_in)  float32 (PyTorch nn.Linear layout, NOT pre-transposed)
    bias   : (num_out,)         float32
    """
    M, K = x.shape
    N = weight.shape[0]

    # Tile selection: full-extent blocks for small dims (no padding needed),
    # MXU/VMEM-friendly tiles for large dims (tn multiple of 128 -> lane-dense
    # stores, tk >= 256 to match the v6e/v7x MXU and amortize per-step cost).
    tm = M if M <= tm else tm
    tn = N if N <= tn else tn
    tk = K if K <= tk else tk

    xp = _pad_dim(_pad_dim(x, 0, tm), 1, tk)
    wp = _pad_dim(_pad_dim(weight, 0, tn), 1, tk)
    bp = _pad_dim(bias, 0, tn).reshape(1, -1)

    Mp, Kp = xp.shape
    Np = wp.shape[0]

    # bf16 operands, f32 accumulation: native MXU throughput + half the
    # weight DMA bytes. Accumulator / bias / output stay f32.
    xp = xp.astype(jnp.bfloat16)
    wp = wp.astype(jnp.bfloat16)
    bp = bp.astype(jnp.float32)

    grid = (Mp // tm, Np // tn, Kp // tk)

    out = pl.pallas_call(
        _linear_kernel,
        out_shape=jax.ShapeDtypeStruct((Mp, Np), x.dtype),
        grid=grid,
        in_specs=[
            pl.BlockSpec((tm, tk), lambda i, j, k: (i, k)),   # x
            pl.BlockSpec((tn, tk), lambda i, j, k: (j, k)),   # weight (out, in)
            pl.BlockSpec((1, tn), lambda i, j, k: (0, j)),    # bias, N-indexed
        ],
        out_specs=pl.BlockSpec((tm, tn), lambda i, j, k: (i, j)),
        scratch_shapes=[pltpu.VMEM((tm, tn), jnp.float32)],
        compiler_params=pltpu.CompilerParams(
            dimension_semantics=("parallel", "parallel", "arbitrary"),
        ),
    )(xp, wp, bp)

    if (Mp, Np) != (M, N):
        out = out[:M, :N]
    return out


if __name__ == "__main__":
    key = jax.random.PRNGKey(0)
    kx, kw, kb = jax.random.split(key, 3)

    # Deterministic synthetic parameters (mimics torch.nn.Linear init scale).
    bound = 1.0 / (NUM_IN ** 0.5)
    x = jax.random.normal(kx, (BATCH, NUM_IN), dtype=jnp.float32)
    weight = jax.random.uniform(kw, (NUM_OUT, NUM_IN), dtype=jnp.float32,
                                minval=-bound, maxval=bound)
    bias = jax.random.uniform(kb, (NUM_OUT,), dtype=jnp.float32,
                              minval=-bound, maxval=bound)

    out = model_forward(x, weight, bias)
    out = jax.block_until_ready(out)
    assert out.shape == (BATCH, NUM_OUT)

    # Reference with the same bf16 input rounding the kernel uses (f32 math).
    xb = x.astype(jnp.bfloat16).astype(jnp.float32)
    wb = weight.astype(jnp.bfloat16).astype(jnp.float32)
    ref_bf16in = jnp.dot(xb, wb.T, precision=jax.lax.Precision.HIGHEST) + bias
    assert jnp.allclose(out, ref_bf16in, atol=1e-3, rtol=1e-3), \
        float(jnp.max(jnp.abs(out - ref_bf16in)))

    # Looser sanity check against the full-f32 reference (bf16 rounding noise).
    ref_f32 = jnp.dot(x, weight.T, precision=jax.lax.Precision.HIGHEST) + bias
    assert jnp.allclose(out, ref_f32, atol=3e-2, rtol=3e-2), \
        float(jnp.max(jnp.abs(out - ref_f32)))

    print("KERNEL_OK")
</pallas_src>

<mosaic_0001>
module attributes {stable_mosaic.version = 11 : i64} {
  func.func @_linear_kernel(%arg0: i32, %arg1: i32, %arg2: i32, %arg3: memref<16x256xbf16, #tpu.memory_space<vmem>>, %arg4: memref<128x256xbf16, #tpu.memory_space<vmem>>, %arg5: memref<1x128xf32, #tpu.memory_space<vmem>>, %arg6: memref<16x128xf32, #tpu.memory_space<vmem>>, %arg7: memref<16x128xf32, #tpu.memory_space<vmem>>) attributes {dimension_semantics = [#tpu.dimension_semantics<parallel>, #tpu.dimension_semantics<parallel>, #tpu.dimension_semantics<arbitrary>], iteration_bounds = array<i64: 1, 1, 2>, scalar_prefetch = 0 : i64, scratch_operands = 1 : i64, tpu.core_type = #tpu.core_type<tc>, window_params = [{transform_indices = @transform_0, window_bounds = array<i64: 16, 256>}, {transform_indices = @transform_1, window_bounds = array<i64: 128, 256>}, {transform_indices = @transform_2, window_bounds = array<i64: 1, 128>}, {transform_indices = @transform_3, window_bounds = array<i64: 16, 128>}]} {
    %c0_i32 = arith.constant 0 : i32
    %0 = arith.cmpi eq, %arg2, %c0_i32 : i32
    %1 = arith.extui %0 : i1 to i32
    %c0_i32_0 = arith.constant 0 : i32
    %2 = arith.cmpi ne, %1, %c0_i32_0 : i32
    scf.if %2 {
      %cst_9 = arith.constant 0.000000e+00 : f32
      %12 = vector.broadcast %cst_9 : f32 to vector<16x128xf32>
      %c0_10 = arith.constant 0 : index
      %c0_11 = arith.constant 0 : index
      %13 = vector.load %arg7[%c0_10, %c0_11] : memref<16x128xf32, #tpu.memory_space<vmem>>, vector<16x128xf32>
      tpu.vector_store %arg7[%c0_10, %c0_11], %12 {strides = array<i32>} : memref<16x128xf32, #tpu.memory_space<vmem>>, vector<16x128xf32>,
    } else {
    }
    %c0 = arith.constant 0 : index
    %c0_1 = arith.constant 0 : index
    %3 = vector.load %arg7[%c0, %c0_1] : memref<16x128xf32, #tpu.memory_space<vmem>>, vector<16x128xf32>
    %c0_2 = arith.constant 0 : index
    %c0_3 = arith.constant 0 : index
    %4 = vector.load %arg3[%c0_2, %c0_3] : memref<16x256xbf16, #tpu.memory_space<vmem>>, vector<16x256xbf16>
    %c0_4 = arith.constant 0 : index
    %c0_5 = arith.constant 0 : index
    %5 = vector.load %arg4[%c0_4, %c0_5] : memref<128x256xbf16, #tpu.memory_space<vmem>>, vector<128x256xbf16>
    %cst = arith.constant dense<0.000000e+00> : vector<16x128xf32>
    %6 = tpu.matmul %4, %5, %cst {dimension_numbers = #tpu.dot_dimension_numbers<[1], [1], [0], [0], [0, 0, 1, 0], [], []>} : vector<16x256xbf16>, vector<128x256xbf16>, vector<16x128xf32> -> vector<16x128xf32>
    %7 = arith.addf %3, %6 : vector<16x128xf32>
    %c0_6 = arith.constant 0 : index
    %c0_7 = arith.constant 0 : index
    %8 = vector.load %arg7[%c0_6, %c0_7] : memref<16x128xf32, #tpu.memory_space<vmem>>, vector<16x128xf32>
    tpu.vector_store %arg7[%c0_6, %c0_7], %7 {strides = array<i32>} : memref<16x128xf32, #tpu.memory_space<vmem>>, vector<16x128xf32>,
    %c1_i32 = arith.constant 1 : i32
    %9 = arith.cmpi eq, %arg2, %c1_i32 : i32
    %10 = arith.extui %9 : i1 to i32
    %c0_i32_8 = arith.constant 0 : i32
    %11 = arith.cmpi ne, %10, %c0_i32_8 : i32
    scf.if %11 {
      %c0_9 = arith.constant 0 : index
      %c0_10 = arith.constant 0 : index
      %12 = vector.load %arg7[%c0_9, %c0_10] : memref<16x128xf32, #tpu.memory_space<vmem>>, vector<16x128xf32>
      %c0_11 = arith.constant 0 : index
      %c0_12 = arith.constant 0 : index
      %13 = vector.load %arg5[%c0_11, %c0_12] : memref<1x128xf32, #tpu.memory_space<vmem>>, vector<1x128xf32>
      %14 = vector.broadcast %13 : vector<1x128xf32> to vector<16x128xf32>
      %15 = arith.addf %12, %14 : vector<16x128xf32>
      %c0_13 = arith.constant 0 : index
      %c0_14 = arith.constant 0 : index
      %16 = vector.load %arg6[%c0_13, %c0_14] : memref<16x128xf32, #tpu.memory_space<vmem>>, vector<16x128xf32>
      tpu.vector_store %arg6[%c0_13, %c0_14], %15 {strides = array<i32>} : memref<16x128xf32, #tpu.memory_space<vmem>>, vector<16x128xf32>,
    } else {
    }
    return
  }
  func.func @transform_0(%arg0: i32, %arg1: i32, %arg2: i32) -> (i32, i32) {
    %c0_i32 = arith.constant 0 : i32
    return %arg0, %arg2 : i32, i32
  }
  func.func @transform_1(%arg0: i32, %arg1: i32, %arg2: i32) -> (i32, i32) {
    %c0_i32 = arith.constant 0 : i32
    return %arg1, %arg2 : i32, i32
  }
  func.func @transform_2(%arg0: i32, %arg1: i32, %arg2: i32) -> (i32, i32) {
    %c0_i32 = arith.constant 0 : i32
    %c0_i32_0 = arith.constant 0 : i32
    return %c0_i32, %arg1 : i32, i32
  }
  func.func @transform_3(%arg0: i32, %arg1: i32, %arg2: i32) -> (i32, i32) {
    %c0_i32 = arith.constant 0 : i32
    return %arg0, %arg1 : i32, i32
  }
}

</mosaic_0001>

<bundles_post_ra>
// kernel: model_forward.1
= control target key start
LH: loop header
LB: loop body
LE: loop exit
PB: predicated region body
PF: predicated region fallthrough
CT: control target
= control target key end

     0   :  { %8 = vsyncpa [#allocation6], 0  ;;  %s900_s12 = smov 0   ;;  %s902_s13 = smov 0   ;;  %s1043_s0 = inlined_call_operand.vmem [shape: bf16[16,512], index: 0, kind: input, shape index: {}]   ;;  %s1044_s1 = inlined_call_operand.vmem [shape: bf16[128,512], index: 1, kind: input, shape index: {}]   ;;  %s1045_s2 = inlined_call_operand.vmem [shape: f32[1,128], index: 2, kind: input, shape index: {}]   ;;  %s1046_s3 = inlined_call_operand.hbm [shape: f32[16,128], index: 3, kind: output, shape index: {}]  }
   0x1   :  { %s904_s14 = smov 0   ;;  %s906_s15 = smov 0  }
   0x2   :  { %s908_s16 = smov 0  }
   0x3 LB: > { %s642_s17 = sadd.s32 4294967295, %s874_s16   ;;  %s26_s18 = sadd.s32 1, %s870_s15  ;;  %s874_s16 = sphi %s908_s16, %s14_s16   ;;  %s870_s15 = sphi %s906_s15, %s1051_s15   ;;  %s866_s14 = sphi %s904_s14, %s1050_s14   ;;  %s862_s13 = sphi %s902_s13, %s1049_s13   ;;  %s858_s12 = sphi %s900_s12, %s1048_s12  }
   0x4   : > { %p27_p0 = scmp.ge.s32.totalorder %s26_s18, 2  ;;  %p49_p1 = scmp.ne.s32.totalorder %s862_s13, %s858_s12 }
   0x5   : > { %p50_p2 = scmp.eq.s32.totalorder %s874_s16, 0  ;;  %s42_s21 = sadd.s32 1, %s862_s13 }
   0x6   : > { %s1053_s18 = smov (%p27_p0, %s26_s18), 0  ;;  %p645_p5 = scmp.ge.s32.totalorder %s874_s16, 2 }
   0x7   : > { %p932_p3 = por %p50_p2, %p49_p1  ;;  %s38_s20 = ssub.s32 %s870_s15, %s1053_s18 }
   0x8   : > { %p40_p4 = scmp.eq.s32.totalorder %s38_s20, 0  ;;  %163 = sbr.rel (%p645_p5) target bundleno = 39 (0x27), region = 20 }
   0xa   : > { %s940_s22 = scalar_select %p40_p4, %s862_s13, %s42_s21  }
   0xd   : > { %166 = sbr.rel (!%p932_p3) target bundleno = 19 (0x13), region = 24  ;;  %s168_s23 = sand.u32 (%p932_p3), 1, %s862_s13  }
   0xe   : > { %s733_s24 = sshll.u32 (%p932_p3), %s870_s15, 3  ;;  %s646_s25 = sshll.u32 (%p932_p3), %s168_s23, 4 }
   0xf   : > { %s176_s28 = scalar_lea.vmem (%p932_p3), %s1043_s0, %s733_s24  ;;  %s170_s29 = scalar_lea.vmem (%p932_p3), [#allocation3], %s646_s25 }
  0x10   : > { %v207_v0 = vld [vmem:[%s176_s28] sm:$0xff] (%p932_p3)  ;;  %v209_v1 = vld [vmem:[%s176_s28 + $0x10] sm:$0xff] (%p932_p3) }
  0x11   : > { %208 = vst [vmem:[%s170_s29] sm:$0xff] (%p932_p3), %v207_v0 }
  0x12   : > { %210 = vst [vmem:[%s170_s29 + $0x8] sm:$0xff] %v209_v1 }
  0x13 PF: > { %216 = sbr.rel (!%p932_p3) target bundleno = 39 (0x27), region = 62  ;;  %s218_s30 = sand.u32 (%p932_p3), 1, %s862_s13  }
  0x14   : > { %s734_s4 = sshll.u32 (%p932_p3), %s870_s15, 3  ;;  %s649_s5 = sshll.u32 (%p932_p3), %s218_s30, 7 }
  0x15   : > { %s957_s8 = scalar_lea.vmem (%p932_p3), %s1044_s1, %s734_s4  ;;  %s220_s9 = scalar_lea.vmem (%p932_p3), [#allocation4], %s649_s5 }
  0x16   : > { %v285_v2 = vld [vmem:[%s957_s8] sm:$0xff] (%p932_p3)  ;;  %v287_v3 = vld [vmem:[%s957_s8 + $0x10] sm:$0xff] (%p932_p3) }
  0x17   : > { %v289_v4 = vld [vmem:[%s957_s8 + $0x20] sm:$0xff] (%p932_p3)  ;;  %286 = vst [vmem:[%s220_s9] sm:$0xff] (%p932_p3), %v285_v2  ;;  %v291_v5 = vld [vmem:[%s957_s8 + $0x30] sm:$0xff] (%p932_p3) }
  0x18   : > { %288 = vst [vmem:[%s220_s9 + $0x8] sm:$0xff] %v287_v3  ;;  %v293_v6 = vld [vmem:[%s957_s8 + $0x40] sm:$0xff]  ;;  %v295_v7 = vld [vmem:[%s957_s8 + $0x50] sm:$0xff] }
  0x19   : > { %290 = vst [vmem:[%s220_s9 + $0x10] sm:$0xff] %v289_v4  ;;  %v297_v8 = vld [vmem:[%s957_s8 + $0x60] sm:$0xff]  ;;  %v299_v9 = vld [vmem:[%s957_s8 + $0x70] sm:$0xff] }
  0x1a   : > { %292 = vst [vmem:[%s220_s9 + $0x18] sm:$0xff] %v291_v5  ;;  %v301_v10 = vld [vmem:[%s957_s8 + $0x80] sm:$0xff]  ;;  %v303_v11 = vld [vmem:[%s957_s8 + $0x90] sm:$0xff] }
  0x1b   : > { %294 = vst [vmem:[%s220_s9 + $0x20] sm:$0xff] %v293_v6  ;;  %v305_v12 = vld [vmem:[%s957_s8 + $0xa0] sm:$0xff]  ;;  %v307_v13 = vld [vmem:[%s957_s8 + $0xb0] sm:$0xff] }
  0x1c   : > { %296 = vst [vmem:[%s220_s9 + $0x28] sm:$0xff] %v295_v7  ;;  %v309_v14 = vld [vmem:[%s957_s8 + $0xc0] sm:$0xff]  ;;  %v311_v15 = vld [vmem:[%s957_s8 + $0xd0] sm:$0xff] }
  0x1d   : > { %298 = vst [vmem:[%s220_s9 + $0x30] sm:$0xff] %v297_v8  ;;  %v313_v16 = vld [vmem:[%s957_s8 + $0xe0] sm:$0xff]  ;;  %v315_v17 = vld [vmem:[%s957_s8 + $0xf0] sm:$0xff] }
  0x1e   : > { %300 = vst [vmem:[%s220_s9 + $0x38] sm:$0xff] %v299_v9 }
  0x1f   : > { %302 = vst [vmem:[%s220_s9 + $0x40] sm:$0xff] %v301_v10 }
  0x20   : > { %304 = vst [vmem:[%s220_s9 + $0x48] sm:$0xff] %v303_v11 }
  0x21   : > { %306 = vst [vmem:[%s220_s9 + $0x50] sm:$0xff] %v305_v12 }
  0x22   : > { %308 = vst [vmem:[%s220_s9 + $0x58] sm:$0xff] %v307_v13 }
  0x23   : > { %310 = vst [vmem:[%s220_s9 + $0x60] sm:$0xff] %v309_v14 }
  0x24   : > { %312 = vst [vmem:[%s220_s9 + $0x68] sm:$0xff] %v311_v15 }
  0x25   : > { %314 = vst [vmem:[%s220_s9 + $0x70] sm:$0xff] %v313_v16 }
  0x26   : > { %316 = vst [vmem:[%s220_s9 + $0x78] sm:$0xff] %v315_v17 }
  0x27 PF: > { %p652_p6 = scmp.ge.s32.totalorder %s874_s16, 1  ;;  %p321_p7 = scmp.lt.s32.totalorder %s874_s16, 3 }
  0x29   : > { %p322_p8 = pnand %p652_p6, %p321_p7 }
  0x2a   : > { %s328_s10 = sand.u32 (!%p322_p8), 1, %s858_s12   ;;  %p655_p9 = scmp.ne.s32.totalorder (!%p322_p8), %s866_s14, 0 }
  0x2b   : > { %325 = sbr.rel (%p322_p8) target bundleno = 278 (0x116), region = 100  ;;  %s653_s11 = sshll.u32 (!%p322_p8), %s328_s10, 4 }
  0x2c   : > { %s654_s19 = sshll.u32 (!%p322_p8), %s328_s10, 7  ;;  %s978_s20 = scalar_lea.vmem (!%p322_p8), [#allocation3], %s653_s11 }
  0x2d   : > { %s980_s21 = scalar_lea.vmem (!%p322_p8), [#allocation4], %s654_s19 }
  0x30   : > { %371 = sbr.rel (%p655_p9) target bundleno = 56 (0x38), region = 112 }
  0x35   : > { %v876_v18 = vmov 0.0  }
  0x36   : > { %372 = vst [vmem:[#allocation2] sm:$0xff] %v876_v18 }
  0x37   : > { %373 = vst [vmem:[#allocation2 + $0x8] sm:$0xff] %v876_v18 }
  0x38 PF: > { %v722_v19 = vld [vmem:[%s980_s21 + $0x70] sm:$0xf]  ;;  %v752_v20 = vld [vmem:[%s980_s21 + $0x74] sm:$0xf0]  ;;  %v751_v21 = vld [vmem:[%s980_s21 + $0x74] sm:$0xf] }
  0x39   : > { %v723_v22 = vor.u32 %v752_v20, %v722_v19  ;;  %v724_v23 = vld [vmem:[%s980_s21 + $0x78] sm:$0xf0]  ;;  %v714_v25 = vld [vmem:[%s980_s21 + $0x60] sm:$0xf]  ;;  %v750_v26 = vld [vmem:[%s980_s21 + $0x64] sm:$0xf0] }
  0x3a   : > { %v727_v24 = vor.u32 %v751_v21, %v724_v23  ;;  %v749_v27 = vld [vmem:[%s980_s21 + $0x64] sm:$0xf]  ;;  %v716_v28 = vld [vmem:[%s980_s21 + $0x68] sm:$0xf0]  ;;  %v715_v29 = vor.u32 %v750_v26, %v714_v25  ;;  %v706_v31 = vld [vmem:[%s980_s21 + $0x50] sm:$0xf] }
  0x3b   : > { %484 = vmatpush.bf16.xpose.msra.mxu0 %v723_v22  ;;  %v719_v30 = vor.u32 %v749_v27, %v716_v28  ;;  %v748_v32 = vld [vmem:[%s980_s21 + $0x54] sm:$0xf0]  ;;  %v747_v33 = vld [vmem:[%s980_s21 + $0x54] sm:$0xf]  ;;  %v708_v34 = vld [vmem:[%s980_s21 + $0x58] sm:$0xf0] }
  0x3c   : > { %498 = vmatpush.bf16.xpose.msra.mxu1 %v727_v24  ;;  %v707_v35 = vor.u32 %v748_v32, %v706_v31  ;;  %v711_v36 = vor.u32 %v747_v33, %v708_v34  ;;  %v698_v37 = vld [vmem:[%s980_s21 + $0x40] sm:$0xf]  ;;  %v746_v38 = vld [vmem:[%s980_s21 + $0x44] sm:$0xf0]  ;;  %v745_v39 = vld [vmem:[%s980_s21 + $0x44] sm:$0xf] }
  0x3d   : > { %v700_v40 = vld [vmem:[%s980_s21 + $0x48] sm:$0xf0]  ;;  %v699_v41 = vor.u32 %v746_v38, %v698_v37  ;;  %v690_v43 = vld [vmem:[%s980_s21 + $0x30] sm:$0xf]  ;;  %v744_v44 = vld [vmem:[%s980_s21 + $0x34] sm:$0xf0] }
  0x3e   : > { %v703_v42 = vor.u32 %v745_v39, %v700_v40  ;;  %v743_v45 = vld [vmem:[%s980_s21 + $0x34] sm:$0xf]  ;;  %v692_v46 = vld [vmem:[%s980_s21 + $0x38] sm:$0xf0]  ;;  %v691_v47 = vor.u32 %v744_v44, %v690_v43  ;;  %v682_v49 = vld [vmem:[%s980_s21 + $0x20] sm:$0xf] }
  0x3f   : > { %v695_v48 = vor.u32 %v743_v45, %v692_v46  ;;  %v742_v50 = vld [vmem:[%s980_s21 + $0x24] sm:$0xf0]  ;;  %v741_v51 = vld [vmem:[%s980_s21 + $0x24] sm:$0xf]  ;;  %v684_v52 = vld [vmem:[%s980_s21 + $0x28] sm:$0xf0] }
  0x40   : > { %v683_v53 = vor.u32 %v742_v50, %v682_v49  ;;  %v687_v54 = vor.u32 %v741_v51, %v684_v52  ;;  %v674_v55 = vld [vmem:[%s980_s21 + $0x10] sm:$0xf]  ;;  %v740_v56 = vld [vmem:[%s980_s21 + $0x14] sm:$0xf0]  ;;  %v739_v57 = vld [vmem:[%s980_s21 + $0x14] sm:$0xf] }
  0x41   : > { %v676_v58 = vld [vmem:[%s980_s21 + $0x18] sm:$0xf0]  ;;  %v675_v59 = vor.u32 %v740_v56, %v674_v55  ;;  %v666_v61 = vld [vmem:[%s980_s21] sm:$0xf]  ;;  %v738_v62 = vld [vmem:[%s980_s21 + $0x4] sm:$0xf0] }
  0x42   : > { %v679_v60 = vor.u32 %v739_v57, %v676_v58  ;;  %v737_v63 = vld [vmem:[%s980_s21 + $0x4] sm:$0xf]  ;;  %v668_v0 = vld [vmem:[%s980_s21 + $0x8] sm:$0xf0]  ;;  %v667_v1 = vor.u32 %v738_v62, %v666_v61  ;;  %v658_v3 = vld [vmem:[%s978_s20] sm:$0xf] }
  0x43   : > { %485 = vmatpush.bf16.xpose.msra.mxu0 %v715_v29  ;;  %v671_v2 = vor.u32 %v737_v63, %v668_v0  ;;  %v736_v4 = vld [vmem:[%s978_s20 + $0x4] sm:$0xf0]  ;;  %v735_v5 = vld [vmem:[%s978_s20 + $0x4] sm:$0xf]  ;;  %v660_v6 = vld [vmem:[%s978_s20 + $0x8] sm:$0xf0] }
  0x44   : > { %499 = vmatpush.bf16.xpose.msra.mxu1 %v719_v30  ;;  %v659_v7 = vor.u32 %v736_v4, %v658_v3  ;;  %v663_v8 = vor.u32 %v735_v5, %v660_v6  ;;  %v374_v10 = vld [vmem:[#allocation2] sm:$0xff]  ;;  %v375_v15 = vld [vmem:[#allocation2 + $0x8] sm:$0xff]  ;;  %p728_p10 = scmp.ne.s32.totalorder %s866_s14, 1 }
  0x4b   : > { %486 = vmatpush.bf16.xpose.msra.mxu0 %v707_v35 }
  0x4c   : > { %500 = vmatpush.bf16.xpose.msra.mxu1 %v711_v36 }
  0x53   : > { %487 = vmatpush.bf16.xpose.msra.mxu0 %v699_v41 }
  0x54   : > { %501 = vmatpush.bf16.xpose.msra.mxu1 %v703_v42 }
  0x5b   : > { %488 = vmatpush.bf16.xpose.msra.mxu0 %v691_v47 }
  0x5c   : > { %502 = vmatpush.bf16.xpose.msra.mxu1 %v695_v48 }
  0x63   : > { %489 = vmatpush.bf16.xpose.msra.mxu0 %v683_v53 }
  0x64   : > { %503 = vmatpush.bf16.xpose.msra.mxu1 %v687_v54 }
  0x6b   : > { %490 = vmatpush.bf16.xpose.msra.mxu0 %v675_v59 }
  0x6c   : > { %504 = vmatpush.bf16.xpose.msra.mxu1 %v679_v60 }
  0x73   : > { %491 = vmatpush.bf16.xpose.msra.mxu0 %v667_v1 }
  0x74   : > { %505 = vmatpush.bf16.xpose.msra.mxu1 %v671_v2 }
  0x7a   : > { %492 = vmatmul.bf16.vlgmr.msra.gmra.mxu0 %v659_v7 }
  0x7b   : > { %506 = vmatmul.bf16.vlgmr.msra.gmra.mxu1 %v663_v8 }
  0xf7   : > { %v493_v9 = vpop.f32.mrf.mxu0 }
  0xf8   : > { %v507_v11 = vpop.f32.mrf.mxu1 }
  0xf9   : > { %v508_v12 = vadd.f32 %v507_v11, %v493_v9 }
  0xfb   : > { %v512_v13 = vadd.f32 %v508_v12, %v374_v10 }
  0xfd   : > { %514 = vst [vmem:[#allocation2] sm:$0xff] %v512_v13 }
  0xff   : > { %v495_v14 = vpop.f32.mrf.mxu0 }
 0x100   : > { %v509_v16 = vpop.f32.mrf.mxu1 }
 0x101   : > { %v510_v17 = vadd.f32 %v509_v16, %v495_v14  ;;  %519 = sbr.rel (%p728_p10) target bundleno = 272 (0x110), region = 116 }
 0x103   : > { %v513_v18 = vadd.f32 %v510_v17, %v375_v15 }
 0x105   : > { %515 = vst [vmem:[#allocation2 + $0x8] sm:$0xff] %v513_v18 }
 0x106   : > { %v520_v19 = vld [vmem:[#allocation2] sm:$0xff] }
 0x107   : > { %v803_v20 = vld [vmem:[%s1045_s2] ss:$0 sm:$0xff] }
 0x108   : > { %v526_v22 = vadd.f32 %v803_v20, %v520_v19 }
 0x10a   : > { %528 = vst [vmem:[#allocation5] sm:$0xff] %v526_v22 }
 0x10c   : > { %v521_v21 = vld [vmem:[#allocation2 + $0x8] sm:$0xff] }
 0x10d   : > { %v527_v23 = vadd.f32 %v803_v20, %v521_v21 }
 0x10f   : > { %529 = vst [vmem:[#allocation5 + $0x8] sm:$0xff] %v527_v23 }
 0x110 PF: > { %p757_p11 = scmp.eq.s32.totalorder %s642_s17, 1  ;;  %s541_s26 = sshll.u32 %s1046_s3, 4  ;;  %s542_s26 = int_to_ptr.hbm [resolvable:$true] %s541_s26 }
 0x111   : > { %s877_s14 = smov [#allocation5]   ;;  %s878_s28 = smov 128  }
 0x112   : > { %s539_s27 = sshll.u32 %s877_s14, 4  ;;  %s879_s29 = smov 8   ;;  %s540_s27 = int_to_ptr.vmem [resolvable:$true] %s539_s27 }
 0x113   : > { %754 = dma.vmem_to_hbm [thread:$0]  (%p757_p11), %s540_s27, 256, %s542_s26, [#allocation6], %s878_s28, %s878_s28, %s879_s29  }
 0x114   : > { %853 = dma.done.wait (%p757_p11), [#allocation6], 256  }
 0x115   : > { %855 = vsyncadd (%p757_p11), [#allocation6], 4294967040 }
 0x116 PF: > { %s14_s16 = sadd.s32 1, %s874_s16   ;;  %s1048_s12 = smov %s862_s13 }
 0x117   : > { %p11_p12 = scmp.ge.s32.totalorder %s14_s16, 4   ;;  %s1049_s13 = smov %s940_s22 }
 0x118   : > { %s1050_s14 = smov %s870_s15  ;;  %s1051_s15 = smov %s1053_s18 }
 0x119   :  { %13 = sbr.rel (!%p11_p12) target bundleno = 3 (0x3), region = 160 }
 0x11e   :  { %558 = vsyncpa [#allocation6], 1 }
 0x11f   :  { %560 = vsyncpa [#allocation6 + $0x1], 1 }

</bundles_post_ra>
